<compile_context>
chip_gen: v7x
topology: tpu7x:2x2x1
jax: 0.10.0
libtpu: 0.0.40
codegen_flags: <defaults>
</compile_context>

<pallas_src>
import functools
import math

import jax
import jax.numpy as jnp
from jax.experimental import pallas as pl
from jax.experimental.pallas import tpu as pltpu


def _mlp_kernel(x_ref, p_ref, o_ref, *, d, d_half, d_quarter):
    # x_ref : (D, tile_L)        -- L on the lane axis
    # p_ref : (rows_pad, 128)    -- all 3 layers' weights + biases, packed, VMEM-resident
    # o_ref : (1, tile_L)        -- lane-dense stores
    x = x_ref[...]
    p = p_ref[...]

    # Static slices of the packed parameter block.
    w1 = p[0:d_half, 0:d]                            # (D/2, D)
    b1 = p[0:d_half, d:d + 1]                        # (D/2, 1)  broadcasts over lanes
    r2 = d_half
    w2 = p[r2:r2 + d_quarter, 0:d_half]              # (D/4, D/2)
    b2 = p[r2:r2 + d_quarter, d_half:d_half + 1]     # (D/4, 1)
    r3 = d_half + d_quarter
    w3 = p[r3:r3 + 1, 0:d_quarter]                   # (1, D/4)
    b3 = p[r3:r3 + 1, d_quarter:d_quarter + 1]       # (1, 1)

    h1 = jnp.maximum(jnp.dot(w1, x, preferred_element_type=jnp.float32) + b1, 0.0)
    h2 = jnp.maximum(jnp.dot(w2, h1, preferred_element_type=jnp.float32) + b2, 0.0)
    h3 = jnp.dot(w3, h2, preferred_element_type=jnp.float32) + b3
    o_ref[...] = jnp.maximum(h3, 0.0)                # final ReLU


def _pack_params(params):
    """Pack (w1,b1,w2,b2,w3,b3) into one (rows_pad, 128) f32 buffer.

    Row layout:       cols 0..n_in-1 = weight row,  col n_in = bias entry.
      rows [0, D/2)        : layer 1
      rows [D/2, D/2+D/4)  : layer 2
      row  D/2+D/4         : layer 3
    """
    w1, b1, w2, b2, w3, b3 = params
    d_half, d = w1.shape
    d_quarter = w2.shape[0]
    assert d + 1 <= 128, "feature_dim must fit within one 128-lane row"
    rows = d_half + d_quarter + 1
    rows_pad = ((rows + 7) // 8) * 8
    p = jnp.zeros((rows_pad, 128), jnp.float32)
    p = p.at[0:d_half, 0:d].set(w1)
    p = p.at[0:d_half, d:d + 1].set(b1.reshape(d_half, 1))
    r = d_half
    p = p.at[r:r + d_quarter, 0:d_half].set(w2)
    p = p.at[r:r + d_quarter, d_half:d_half + 1].set(b2.reshape(d_quarter, 1))
    r = d_half + d_quarter
    p = p.at[r:r + 1, 0:d_quarter].set(w3)
    p = p.at[r:r + 1, d_quarter:d_quarter + 1].set(b3.reshape(1, 1))
    return p


def generator_forward(x, params, *, max_tile_l=32768, min_grid_steps=4):
    """x: (B, feature_dim, L) float32  ->  (B, L, 1) float32."""
    w1 = params[0]
    B, D, L = x.shape
    assert D % 4 == 0 and w1.shape == (D // 2, D), (w1.shape, D)

    # Lane-dense tile over L: full L if it fits (block == full dim satisfies the
    # (8,128) rule), otherwise a multiple of 128.  32768 -> 4 MiB f32 x block.
    if L <= max_tile_l:
        tile_l = L
    else:
        tile_l = max(128, (max_tile_l // 128) * 128)
    n_l = pl.cdiv(L, tile_l)

    # Small-batch / long-sequence: guarantee >= min_grid_steps grid steps so the
    # pipeline has DMA/compute overlap and both v7x TensorCores get work.
    if B * n_l < min_grid_steps and L >= 4096:
        per_batch = pl.cdiv(min_grid_steps, B)
        cand = ((pl.cdiv(L, per_batch) + 127) // 128) * 128
        tile_l = max(1024, min(tile_l, cand))
        n_l = pl.cdiv(L, tile_l)

    packed = _pack_params(params)
    kernel = functools.partial(_mlp_kernel, d=D, d_half=D // 2, d_quarter=D // 4)

    out = pl.pallas_call(
        kernel,
        out_shape=jax.ShapeDtypeStruct((B, 1, L), jnp.float32),
        grid=(B, n_l),
        in_specs=[
            pl.BlockSpec((None, D, tile_l), lambda b, j: (b, 0, j)),   # x tile
            pl.BlockSpec(packed.shape, lambda b, j: (0, 0)),           # packed weights
        ],
        out_specs=pl.BlockSpec((None, 1, tile_l), lambda b, j: (b, 0, j)),
        compiler_params=pltpu.CompilerParams(
            dimension_semantics=("parallel", "parallel"),
            # tile_l=32768 keeps ~14 MiB in flight (8 MiB double-buffered x block,
            # out block, intermediates); 32 MiB covers it on v5e/v6e/v7x alike.
            vmem_limit_bytes=32 * 1024 * 1024,
        ),
    )(x, packed)

    # (B, 1, L) and (B, L, 1) have identical memory order -> free reshape.
    return out.reshape(B, L, 1)


def init_generator_params(key, feature_dim=32):
    """Xavier-uniform weights (same bound as nn.init.xavier_uniform_), zero biases.

    Weights stored in the PyTorch (out_features, in_features) layout; biases 1-D.
    """
    dims = [feature_dim, feature_dim // 2, feature_dim // 4, 1]
    params = []
    for i in range(3):
        fan_in, fan_out = dims[i], dims[i + 1]
        key, sub = jax.random.split(key)
        bound = math.sqrt(6.0 / (fan_in + fan_out))
        w = jax.random.uniform(sub, (fan_out, fan_in), jnp.float32, -bound, bound)
        b = jnp.zeros((fan_out,), jnp.float32)
        params.extend([w, b])
    return tuple(params)


def _reference_forward(x, params):
    """Pure-JAX reference (mirrors the PyTorch module exactly)."""
    w1, b1, w2, b2, w3, b3 = params
    h = jnp.transpose(x, (0, 2, 1))                    # (B, L, D)
    h = jax.nn.relu(h @ w1.T + b1)
    h = jax.nn.relu(h @ w2.T + b2)
    h = h @ w3.T + b3
    return jax.nn.relu(h)                              # (B, L, 1)


if __name__ == "__main__":
    feature_dim = 32

    key = jax.random.PRNGKey(0)
    k_x, k_p, k_x2, k_b1, k_b2, k_b3 = jax.random.split(key, 6)
    params = init_generator_params(k_p, feature_dim)

    # 1) Small-shape check (single tile per batch element), zero biases (PyTorch init).
    B, L = 2, 8
    x = jax.random.normal(k_x, (B, feature_dim, L), jnp.float32)
    out = jax.block_until_ready(generator_forward(x, params))
    ref = _reference_forward(x, params)
    assert out.shape == (B, L, 1), out.shape
    assert jnp.allclose(out, ref, atol=1e-5, rtol=1e-5), "mismatch vs reference"

    # 2) Nonzero biases: exercises the (n_out, 1) lane-broadcast bias-add path.
    w1, _, w2, _, w3, _ = params
    params_nzb = (
        w1, jax.random.normal(k_b1, (feature_dim // 2,), jnp.float32),
        w2, jax.random.normal(k_b2, (feature_dim // 4,), jnp.float32),
        w3, jax.random.normal(k_b3, (1,), jnp.float32),
    )
    out_b = jax.block_until_ready(generator_forward(x, params_nzb))
    ref_b = _reference_forward(x, params_nzb)
    assert jnp.allclose(out_b, ref_b, atol=1e-5, rtol=1e-5), "mismatch (nonzero bias)"

    # 3) Ragged multi-tile check: L=300 with tile_l=128 exercises the (B, n_l) grid
    #    and the masked partial final tile (no pad-lane garbage may leak out).
    B2, L2 = 1, 300
    x2 = jax.random.normal(k_x2, (B2, feature_dim, L2), jnp.float32)
    out2 = jax.block_until_ready(generator_forward(x2, params_nzb, max_tile_l=128))
    ref2 = _reference_forward(x2, params_nzb)
    assert out2.shape == (B2, L2, 1), out2.shape
    assert jnp.allclose(out2, ref2, atol=1e-5, rtol=1e-5), "mismatch (ragged tiles)"

    print("KERNEL_OK")
</pallas_src>

<mosaic_0001>
module attributes {stable_mosaic.version = 11 : i64} {
  func.func @_mlp_kernel(%arg0: i32, %arg1: i32, %arg2: memref<1x32x8xf32, #tpu.memory_space<vmem>>, %arg3: memref<32x128xf32, #tpu.memory_space<vmem>>, %arg4: memref<1x1x8xf32, #tpu.memory_space<vmem>>) attributes {dimension_semantics = [#tpu.dimension_semantics<parallel>, #tpu.dimension_semantics<parallel>], iteration_bounds = array<i64: 2, 1>, scalar_prefetch = 0 : i64, scratch_operands = 0 : i64, tpu.core_type = #tpu.core_type<tc>, window_params = [{transform_indices = @transform_0, window_bounds = array<i64: 1, 32, 8>}, {pipeline_mode = #tpu.pipeline_mode<synchronous>, transform_indices = @transform_1, window_bounds = array<i64: 32, 128>}, {transform_indices = @transform_2, window_bounds = array<i64: 1, 1, 8>}]} {
    %c0 = arith.constant 0 : index
    %c0_0 = arith.constant 0 : index
    %c0_1 = arith.constant 0 : index
    %0 = vector.load %arg2[%c0, %c0_0, %c0_1] : memref<1x32x8xf32, #tpu.memory_space<vmem>>, vector<1x32x8xf32>
    %1 = vector.shape_cast %0 : vector<1x32x8xf32> to vector<32x8xf32>
    %c0_2 = arith.constant 0 : index
    %c0_3 = arith.constant 0 : index
    %2 = vector.load %arg3[%c0_2, %c0_3] : memref<32x128xf32, #tpu.memory_space<vmem>>, vector<32x128xf32>
    %3 = vector.extract_strided_slice %2 {offsets = [0, 0], sizes = [16, 32], strides = [1, 1]} : vector<32x128xf32> to vector<16x32xf32>
    %4 = vector.extract_strided_slice %2 {offsets = [0, 32], sizes = [16, 1], strides = [1, 1]} : vector<32x128xf32> to vector<16x1xf32>
    %5 = vector.extract_strided_slice %2 {offsets = [16, 0], sizes = [8, 16], strides = [1, 1]} : vector<32x128xf32> to vector<8x16xf32>
    %6 = vector.extract_strided_slice %2 {offsets = [16, 16], sizes = [8, 1], strides = [1, 1]} : vector<32x128xf32> to vector<8x1xf32>
    %7 = vector.extract_strided_slice %2 {offsets = [24, 0], sizes = [1, 8], strides = [1, 1]} : vector<32x128xf32> to vector<1x8xf32>
    %8 = vector.extract_strided_slice %2 {offsets = [24, 8], sizes = [1, 1], strides = [1, 1]} : vector<32x128xf32> to vector<1x1xf32>
    %cst = arith.constant dense<0.000000e+00> : vector<16x8xf32>
    %9 = tpu.matmul %3, %1, %cst {dimension_numbers = #tpu.dot_dimension_numbers<[1], [0], [0], [1], [0, 0, 1, 1], [], []>} : vector<16x32xf32>, vector<32x8xf32>, vector<16x8xf32> -> vector<16x8xf32>
    %10 = vector.broadcast %4 : vector<16x1xf32> to vector<16x8xf32>
    %11 = arith.addf %9, %10 : vector<16x8xf32>
    %cst_4 = arith.constant 0.000000e+00 : f32
    %12 = vector.broadcast %cst_4 : f32 to vector<16x8xf32>
    %13 = arith.maximumf %11, %12 : vector<16x8xf32>
    %cst_5 = arith.constant dense<0.000000e+00> : vector<8x8xf32>
    %14 = tpu.matmul %5, %13, %cst_5 {dimension_numbers = #tpu.dot_dimension_numbers<[1], [0], [0], [1], [0, 0, 1, 1], [], []>} : vector<8x16xf32>, vector<16x8xf32>, vector<8x8xf32> -> vector<8x8xf32>
    %15 = vector.broadcast %6 : vector<8x1xf32> to vector<8x8xf32>
    %16 = arith.addf %14, %15 : vector<8x8xf32>
    %cst_6 = arith.constant 0.000000e+00 : f32
    %17 = vector.broadcast %cst_6 : f32 to vector<8x8xf32>
    %18 = arith.maximumf %16, %17 : vector<8x8xf32>
    %cst_7 = arith.constant dense<0.000000e+00> : vector<1x8xf32>
    %19 = tpu.matmul %7, %18, %cst_7 {dimension_numbers = #tpu.dot_dimension_numbers<[1], [0], [0], [1], [0, 0, 1, 1], [], []>} : vector<1x8xf32>, vector<8x8xf32>, vector<1x8xf32> -> vector<1x8xf32>
    %20 = vector.broadcast %8 : vector<1x1xf32> to vector<1x8xf32>
    %21 = arith.addf %19, %20 : vector<1x8xf32>
    %cst_8 = arith.constant 0.000000e+00 : f32
    %22 = vector.broadcast %cst_8 : f32 to vector<1x8xf32>
    %23 = arith.maximumf %21, %22 : vector<1x8xf32>
    %c0_9 = arith.constant 0 : index
    %c0_10 = arith.constant 0 : index
    %c0_11 = arith.constant 0 : index
    %24 = vector.load %arg4[%c0_9, %c0_10, %c0_11] : memref<1x1x8xf32, #tpu.memory_space<vmem>>, vector<1x1x8xf32>
    %25 = vector.shape_cast %24 : vector<1x1x8xf32> to vector<1x8xf32>
    %26 = vector.shape_cast %23 : vector<1x8xf32> to vector<1x1x8xf32>
    tpu.vector_store %arg4[%c0_9, %c0_10, %c0_11], %26 {strides = array<i32>} : memref<1x1x8xf32, #tpu.memory_space<vmem>>, vector<1x1x8xf32>,
    return
  }
  func.func @transform_0(%arg0: i32, %arg1: i32) -> (i32, i32, i32) {
    %c0_i32 = arith.constant 0 : i32
    %c0_i32_0 = arith.constant 0 : i32
    return %arg0, %c0_i32, %arg1 : i32, i32, i32
  }
  func.func @transform_1(%arg0: i32, %arg1: i32) -> (i32, i32) {
    %c0_i32 = arith.constant 0 : i32
    %c0_i32_0 = arith.constant 0 : i32
    %c0_i32_1 = arith.constant 0 : i32
    return %c0_i32, %c0_i32_0 : i32, i32
  }
  func.func @transform_2(%arg0: i32, %arg1: i32) -> (i32, i32, i32) {
    %c0_i32 = arith.constant 0 : i32
    %c0_i32_0 = arith.constant 0 : i32
    return %arg0, %c0_i32, %arg1 : i32, i32, i32
  }
}

</mosaic_0001>

<bundles_post_ra>
// kernel: tpu_custom_call.1
= control target key start
LH: loop header
LB: loop body
LE: loop exit
PB: predicated region body
PF: predicated region fallthrough
CT: control target
= control target key end

     0   :  { %7 = vsyncpa [#allocation3], 0  ;;  %s865_s0 = inlined_call_operand.vmem [shape: f32[2,32,8], index: 0, kind: input, shape index: {}]   ;;  %s866_s1 = inlined_call_operand.vmem [shape: f32[32,128], index: 1, kind: input, shape index: {}]   ;;  %s867_s2 = inlined_call_operand.hbm [shape: f32[2,1,8], index: 2, kind: output, shape index: {}]  }
   0x1   :  { %9 = vsyncpa [#allocation3 + $0x1], 0  ;;  %s737_s9 = smov 0   ;;  %s739_s10 = smov 0  }
   0x2   :  { %s741_s11 = smov 0   ;;  %s743_s12 = smov 0  }
   0x3   :  { %s745_s13 = smov 0   ;;  %s747_s14 = smov 0  }
   0x4 LB: > { %s510_s15 = sadd.s32 4294967295, %s713_s14   ;;  %s511_s16 = sadd.s32 4294967294, %s713_s14   ;;  %s713_s14 = sphi %s747_s14, %s15_s14   ;;  %s709_s13 = sphi %s745_s13, %s874_s13   ;;  %s705_s12 = sphi %s743_s12, %s873_s12   ;;  %s701_s11 = sphi %s741_s11, %s872_s11   ;;  %s697_s10 = sphi %s739_s10, %s871_s10   ;;  %s693_s9 = sphi %s737_s9, %s870_s9  }
   0x5   : > { %s27_s17 = sadd.s32 1, %s709_s13  ;;  %s85_s18 = sadd.s32 1, %s701_s11 }
   0x6   : > { %p29_p0 = scmp.ge.s32.totalorder %s27_s17, 2  ;;  %p95_p1 = scmp.ne.s32.totalorder %s701_s11, %s697_s10 }
   0x7   : > { %p96_p2 = scmp.eq.s32.totalorder %s510_s15, 1  ;;  %p101_p3 = scmp.ne.s32.totalorder %s697_s10, %s693_s9 }
   0x8   : > { %s876_s17 = smov (%p29_p0, %s27_s17), 0  ;;  %p102_p5 = scmp.eq.s32.totalorder %s511_s16, 1 }
   0x9   : > { %p777_p4 = por %p96_p2, %p95_p1  ;;  %s80_s20 = ssub.s32 %s709_s13, %s876_s17 }
   0xa   : > { %p514_p6 = scmp.ge.s32.totalorder %s713_s14, 1  ;;  %p83_p7 = scmp.eq.s32.totalorder %s80_s20, 0 }
   0xb   : > { %p784_p8 = por %p102_p5, %p101_p3  ;;  %p134_p9 = scmp.lt.s32.totalorder %s713_s14, 3 }
   0xc   : > { %s790_s22 = scalar_select %p83_p7, %s701_s11, %s85_s18  }
   0xd   : > { %p135_p10 = pnand %p514_p6, %p134_p9 }
   0xe   : > { %p158_p11 = scmp.lt.s32.totalorder (!%p135_p10), %s705_s12, 1  ;;  %v170_v0 = vld [vmem:[%s866_s1] sm:$0xff] (!%p135_p10)  ;;  %vm184_vm0 = vcmask (!%p135_p10), 261120   ;;  %v715_v1 = vmov (!%p135_p10), 32   ;;  %v171_v2 = vld [vmem:[%s866_s1 + $0x8] sm:$0xff] (!%p135_p10)  ;;  %v716_v9 = vmov (!%p135_p10), 0.0|0.0  }
   0xf   : > { %138 = sbr.rel (%p135_p10) target bundleno = 706 (0x2c2), region = 28  ;;  %544 = vmatprep.mubr.msk.f32.mxu0 (!%p135_p10), %vm184_vm0, %v170_v0  ;;  %631 = vset.pattern.permute.xlu0 (!%p135_p10), %v715_v1  ;;  %vm717_vm1 = vmmov (!%p135_p10), 0   ;;  %v718_v10 = vmov (!%p135_p10), 0.0   ;;  %v172_v11 = vld [vmem:[%s866_s1 + $0x10] sm:$0xff] (!%p135_p10)  ;;  %v719_v12 = vmov (!%p135_p10), 16   ;;  %vm271_vm2 = vcmask (!%p135_p10), 130048  }
  0x10   : > { %176 = vperm.xlu0 (!%p135_p10), %631, %v170_v0   ;;  %567 = vmatprep.subr.bf16.mxu1 (!%p135_p10), %v716_v9  ;;  %v173_v22 = vld [vmem:[%s866_s1 + $0x18] sm:$0xff] (!%p135_p10)  ;;  %v720_v23 = vmov (!%p135_p10), 8   ;;  %vm350_vm3 = vcmask (!%p135_p10), 64512   ;;  %s156_s8 = sand.u32 (!%p135_p10), 1, %s697_s10   ;;  %s521_s15 = sshll.u32 (!%p135_p10), %s705_s12, 4  ;;  %vm424_vm4 = vcmask (!%p135_p10), 57344  }
  0x11   : > { %551 = vmatprep.mubr.msk.f32.mxu1 (!%p135_p10), %vm717_vm1, %v718_v10  ;;  %632 = vset.pattern.permute.xlu1 (!%p135_p10), %v719_v12  ;;  %s157_s16 = scalar_lea.vmem (!%p135_p10), [#allocation2], %s156_s8  ;;  %s818_s24 = scalar_lea.hbm (!%p135_p10), %s867_s2, %s521_s15 }
  0x12   : > { %268 = vperm.xlu1 (!%p135_p10), %632, %v172_v11   ;;  %s440_s18 = sshll.u32 (!%p135_p10), %s157_s16, 4  ;;  %s820_s18 = int_to_ptr.vmem [resolvable:$true] %s440_s18 }
  0x14   : > { %181 = vperm.xlu0 (!%p135_p10), %631, %v171_v2  }
  0x16   : > { %s159_s25 = scalar_select %p158_p11, %s705_s12, 1  ;;  %633 = vset.pattern.permute.xlu1 %v720_v23 }
  0x17   : > { %347 = vperm.xlu1 %633, %v173_v22   ;;  %s721_s12 = smov [#allocation2]  }
  0x18   : > { %s524_s26 = sshll.u32 %s159_s25, 5  ;;  %634 = vset.pattern.permute.xlu0 %v720_v23  ;;  %s427_s25 = scalar_lea.sflag [#allocation3], %s156_s8 }
  0x19   : > { %s165_s29 = scalar_lea.vmem %s865_s0, %s524_s26  ;;  %s635_s26 = scalar_lea.vmem %s820_s18, 16 }
  0x1a   : > { %v166_v3 = vld [vmem:[%s165_s29] sm:$0xff]  ;;  %v167_v4 = vld [vmem:[%s165_s29 + $0x8] sm:$0xff]  ;;  %v168_v5 = vld [vmem:[%s165_s29 + $0x10] sm:$0xff]  ;;  %p636_p12 = scmp.ne.s32.totalorder %s820_s18, %s635_s26  ;;  %s639_s27 = sshll.u32 %s721_s12, 4  ;;  %s640_s27 = int_to_ptr.vmem [resolvable:$false] %s639_s27 }
  0x1b   : > { %v559_v6 = vpack.c.bf16 %v167_v4, %v166_v3  ;;  %v169_v7 = vld [vmem:[%s165_s29 + $0x18] sm:$0xff]  ;;  %s641_s28 = scalar_lea.vmem %s640_s27, 32  ;;  %p642_p1 = scmp.lt.s32.totalorder %s820_s18, %s640_s27 }
  0x1c   : > { %v563_v8 = vpack.c.bf16 %v169_v7, %v168_v5  ;;  %p637_p13 = pnand %p636_p12, %p777_p4  ;;  %p643_p2 = scmp.lt.s32.totalorder %s641_s28, %s635_s26 }
  0x1d   : > { %560 = vmatprep.subr.bf16.mxu0 %v559_v6 }
  0x1e   : > { %562 = vmatpush3.bf16.msra.mxu0 %v559_v6  ;;  %p638_p0 = pneg %p637_p13  ;;  %p644_p3 = por %p643_p2, %p642_p1 }
  0x1f   : > { %564 = vmatprep.subr.bf16.mxu0 %v563_v8 }
  0x20   : > { %p645_p5 = pnand %p644_p3, %p638_p0 }
  0x22   : > { %566 = vmatpush3.bf16.msra.mxu0 %v563_v8 }
  0x25   : > { %545 = vmatmul.mubr.msk.f32.vlgmr.msra.gmra.mrb[0].mxu0 %vm184_vm0, %v171_v2 }
  0x8f   : > { %v177_v13 = vpop.permute.xlu0 %176 }
  0x91   : > { %v269_v24 = vpop.permute.xlu1 %268 }
  0x93   : > { %v182_v14 = vpop.permute.xlu0 %181 }
  0x96   : > { %v348_v29 = vpop.permute.xlu1 %347 }
  0xf8   : > { %v546_v15 = vpop.f32.mrb[0].mxu0 }
  0xf9   : > { %v261_v16 = vadd.f32 %v546_v15, %v182_v14  ;;  %v255_v17 = vpop.f32.mrb[1].mxu0 }
  0xfa   : > { %v256_v18 = vadd.f32 %v255_v17, %v177_v13 }
  0xfb   : > { %v265_v19 = vmax.f32 %v261_v16, 0.0 }
  0xfc   : > { %v264_v20 = vmax.f32 %v256_v18, 0.0 }
  0xfe   : > { %v568_v21 = vpack.c.bf16 %v265_v19, %v264_v20 }
 0x100   : > { %569 = vmatpush3.bf16.msra.mxu1 %v568_v21 }
 0x101   : > { %554 = vmatprep.subr.mxu1 %v718_v10 }
 0x103   : > { %552 = vmatmul.mubr.msk.f32.vlgmr.msra.gmra.mrb[0].mxu1 %vm271_vm2, %v172_v11 }
 0x104   : > { %556 = vmatprep.mubr.msk.f32.mxu1 %vm717_vm1, %v718_v10 }
 0x1d6   : > { %v340_v25 = vpop.f32.mrb[0].mxu1 }
 0x1d7   : > { %v341_v26 = vadd.f32 %v340_v25, %v269_v24  ;;  %v553_v27 = vpop.f32.mrb[1].mxu1 }
 0x1d9   : > { %v344_v28 = vmax.f32 %v341_v26, 0.0 }
 0x1db   : > { %555 = vmatpush3.msra.mxu1 %v344_v28 }
 0x1dc   : > { %557 = vmatmul.mubr.msk.f32.vlgmr.msra.gmra.mrb[2].mxu1 %vm350_vm3, %v173_v22 }
 0x2af   : > { %v419_v30 = vpop.f32.mrb[2].mxu1 }
 0x2b0   : > { %v420_v31 = vadd.f32 %v419_v30, %v348_v29  ;;  %v558_v32 = vpop.f32.mrb[3].mxu1 }
 0x2b2   : > { %v423_v33 = vmax.f32 %v420_v31, 0.0 }
 0x2b4   : > { %425 = vst.msk [vmem:[%s157_s16] sm:$0x1] %vm424_vm4, %v423_v33 }
 0x2b5   : > { %648 = shalt.err (!%p645_p5)
}
 0x2b6   : > { %s649_s29 = scalar_lea.hbm %s818_s24, 16  ;;  %s653_s4 = scalar_lea.hbm %s867_s2, 32 }
 0x2b7   : > { %p650_p6 = scmp.ne.s32.totalorder %s818_s24, %s649_s29  ;;  %p654_p10 = scmp.lt.u32.totalorder %s818_s24, %s867_s2 }
 0x2b8   : > { %p655_p11 = scmp.lt.u32.totalorder %s653_s4, %s649_s29  ;;  %p657_p13 = scmp.lt.u32.totalorder %s649_s29, %s818_s24 }
 0x2b9   : > { %p651_p7 = pnand %p650_p6, %p777_p4 }
 0x2ba   : > { %p656_p12 = por %p655_p11, %p654_p10 }
 0x2bb   : > { %p652_p9 = pneg %p651_p7 }
 0x2bc   : > { %p658_p0 = por %p657_p13, %p656_p12 }
 0x2be   : > { %p659_p1 = pnand %p658_p0, %p652_p9 }
 0x2c0   : > { %662 = shalt.err (!%p659_p1)
}
 0x2c1   : > { %570 = dma.vmem_to_hbm [thread:$0]  (%p777_p4), %s820_s18, 16, %s818_s24, %s427_s25  }
 0x2c2 PF: > { %p576_p2 = scmp.ge.s32.totalorder %s713_s14, 2  ;;  %s452_s7 = sand.u32 1, %s693_s9  }
 0x2c3   : > { %s453_s8 = scalar_lea.sflag [#allocation3], %s452_s7 }
 0x2c4   : > { %p573_p3 = pnand %p576_p2, %p784_p8 }
 0x2c6   : > { %688 = dma.done.wait (!%p573_p3), %s453_s8, 16  }
 0x2c7   : > { %690 = vsyncadd (!%p573_p3), %s453_s8, 4294967280  ;;  %s15_s14 = sadd.s32 1, %s713_s14   ;;  %s870_s9 = smov %s697_s10 }
 0x2c8   : > { %p12_p5 = scmp.ge.s32.totalorder %s15_s14, 4   ;;  %s871_s10 = smov %s701_s11 }
 0x2c9   : > { %s872_s11 = smov %s790_s22  ;;  %s873_s12 = smov %s709_s13 }
 0x2ca   : > { %s874_s13 = smov %s876_s17  ;;  %14 = sbr.rel (!%p12_p5) target bundleno = 4 (0x4), region = 63 }
 0x2d1   :  { %457 = vsyncpa [#allocation3], 1 }
 0x2d2   :  { %459 = vsyncpa [#allocation3 + $0x1], 1 }

</bundles_post_ra>
